<compile_context>
chip_gen: v5e
topology: v5e:2x2
jax: 0.10.0
libtpu: 0.0.40
codegen_flags: <defaults>
</compile_context>

<pallas_src>
import functools

import jax
import jax.numpy as jnp
from jax.experimental import pallas as pl
from jax.experimental.pallas import tpu as pltpu

LANES = 128


def _round_up(n, m):
    return ((n + m - 1) // m) * m


def ppo_actor_critic_kernel(
    x_ref,      # [TB, S]        f32  (cast to bf16 in-kernel)
    w1_ref,     # [S, H]         bf16
    b1_ref,     # [1, H]         f32
    wh_ref,     # [H, 128]       bf16  (fused actor|critic, zero-padded)
    bh_ref,     # [1, 128]       f32   (fused actor|critic bias, zero-padded)
    out_ref,    # [OUT_ROWS, TB] f32   (rows 0..A-1 = probs, row A = value)
    *,
    action_dim,
):
    # shared: Linear(state_dim -> hidden) + ReLU  (bf16 MXU, f32 accumulate).
    # The f32->bf16 cast happens on the VPU here; free under the HBM bottleneck.
    x = x_ref[...].astype(jnp.bfloat16)
    h = jnp.dot(x, w1_ref[...], preferred_element_type=jnp.float32)
    h = jnp.maximum(h + b1_ref[...], 0.0)

    # fused actor+critic heads: one lane-dense [TB, 128] matmul
    fused = jnp.dot(h.astype(jnp.bfloat16), wh_ref[...],
                    preferred_element_type=jnp.float32) + bh_ref[...]

    col = jax.lax.broadcasted_iota(jnp.int32, fused.shape, 1)
    is_action = col < action_dim
    is_value = col == action_dim

    # softmax over the action lanes; padded lanes masked to -inf -> exp 0
    logits = jnp.where(is_action, fused, -jnp.inf)
    m = jnp.max(logits, axis=-1, keepdims=True)
    e = jnp.exp(logits - m)
    denom = jnp.sum(e, axis=-1, keepdims=True)          # >= 1, finite
    r = pl.reciprocal(denom, approx=True)
    r = r * (2.0 - denom * r)                            # one Newton step
    probs = e * r                                        # non-action lanes are 0

    # probs already has zeros in every non-action lane, so a single select
    # drops the critic value into lane A.
    result = probs + jnp.where(is_value, fused, 0.0)     # [TB, 128] f32

    # Transpose on the XLU so batch lands on the lane axis, keep only the
    # OUT_ROWS useful sublanes -> tiny, unmasked HBM writeback.
    out_rows = out_ref.shape[0]
    out_ref[...] = jnp.transpose(result)[:out_rows, :].astype(out_ref.dtype)


def prepare_params(w1, b1, wa, ba, wc, bc):
    """Fuse/cast parameters once; reuse across many forward calls."""
    H = w1.shape[1]
    A = wa.shape[1]
    assert A + 1 <= LANES, "action_dim + 1 must fit in one 128-lane head"

    w_heads = jnp.zeros((H, LANES), jnp.bfloat16)
    w_heads = w_heads.at[:, :A].set(wa.astype(jnp.bfloat16))
    w_heads = w_heads.at[:, A:A + 1].set(wc.astype(jnp.bfloat16))
    b_heads = jnp.zeros((1, LANES), jnp.float32)
    b_heads = b_heads.at[:, :A].set(ba.astype(jnp.float32).reshape(1, -1))
    b_heads = b_heads.at[:, A:A + 1].set(bc.astype(jnp.float32).reshape(1, -1))

    return (w1.astype(jnp.bfloat16),
            b1.astype(jnp.float32).reshape(1, -1),
            w_heads, b_heads, A)


def ppo_actor_critic_forward(x, prepared, *, block_b=1024):
    w1_bf, b1_f, w_heads, b_heads, A = prepared
    B, S = x.shape
    H = w1_bf.shape[1]
    out_rows = _round_up(A + 1, 8)

    # Batch tiling: tiles are multiples of 128 so the transposed output stores
    # stay lane-dense; split the tile so v7x's two TensorCores both get work.
    block_b = max(128, _round_up(block_b, 128))
    bp_min = _round_up(B, 128)
    tb = min(block_b, bp_min)
    if bp_min >= 2 * 128 and bp_min // tb < 2:
        tb = _round_up((bp_min + 1) // 2, 128)
    Bp = _round_up(B, tb)

    # Pad the batch only when it doesn't already divide the tile; with the
    # transposed output, a padded tile costs only ~160 B/row of HBM traffic.
    x_in = x if Bp == B else jnp.pad(x, ((0, Bp - B), (0, 0)))

    kernel = functools.partial(ppo_actor_critic_kernel, action_dim=A)

    out = pl.pallas_call(
        kernel,
        out_shape=jax.ShapeDtypeStruct((out_rows, Bp), jnp.float32),
        grid_spec=pltpu.PrefetchScalarGridSpec(
            num_scalar_prefetch=0,
            grid=(Bp // tb,),
            in_specs=[
                pl.BlockSpec((tb, S), lambda i: (i, 0)),        # x tiles stream (f32)
                pl.BlockSpec((S, H), lambda i: (0, 0)),         # weights stay
                pl.BlockSpec((1, H), lambda i: (0, 0)),         #   VMEM-resident
                pl.BlockSpec((H, LANES), lambda i: (0, 0)),
                pl.BlockSpec((1, LANES), lambda i: (0, 0)),
            ],
            out_specs=pl.BlockSpec((out_rows, tb), lambda i: (0, i)),
        ),
        compiler_params=pltpu.CompilerParams(
            dimension_semantics=("parallel",),          # shard batch across TCs
            vmem_limit_bytes=32 * 1024 * 1024,          # safe on v5e/v6e/v7x
        ),
    )(x_in, w1_bf, b1_f, w_heads, b_heads)

    probs = jnp.transpose(out[:A, :B])                  # [B, A]
    value = jnp.transpose(out[A:A + 1, :B])             # [B, 1]
    return probs, value


def init_params(key, state_dim, action_dim, hidden_dim=128):
    """Deterministic PyTorch-style uniform(-1/sqrt(fan_in), 1/sqrt(fan_in)) init."""
    ks = jax.random.split(key, 6)

    def lin(kw, kb, fan_in, fan_out):
        bound = 1.0 / jnp.sqrt(jnp.float32(fan_in))
        w = jax.random.uniform(kw, (fan_in, fan_out), jnp.float32, -bound, bound)
        b = jax.random.uniform(kb, (1, fan_out), jnp.float32, -bound, bound)
        return w, b

    w1, b1 = lin(ks[0], ks[1], state_dim, hidden_dim)
    wa, ba = lin(ks[2], ks[3], hidden_dim, action_dim)
    wc, bc = lin(ks[4], ks[5], hidden_dim, 1)
    return w1, b1, wa, ba, wc, bc


if __name__ == "__main__":
    key = jax.random.PRNGKey(0)
    k_x, k_p = jax.random.split(key)

    batch = 8
    state_dim = 32
    action_dim = 4
    hidden_dim = 128

    x = jax.random.normal(k_x, (batch, state_dim), jnp.float32)
    params = init_params(k_p, state_dim, action_dim, hidden_dim)
    prepared = prepare_params(*params)            # fuse/cast weights once

    probs, value = ppo_actor_critic_forward(x, prepared)
    jax.block_until_ready((probs, value))

    # Pure-JAX reference with the same bf16 matmul inputs / f32 accumulation.
    w1, b1, wa, ba, wc, bc = params
    x_bf = x.astype(jnp.bfloat16)
    h_ref = jnp.maximum(
        jnp.dot(x_bf, w1.astype(jnp.bfloat16),
                preferred_element_type=jnp.float32) + b1, 0.0)
    h_bf = h_ref.astype(jnp.bfloat16)
    logits_ref = jnp.dot(h_bf, wa.astype(jnp.bfloat16),
                         preferred_element_type=jnp.float32) + ba
    probs_ref = jax.nn.softmax(logits_ref, axis=-1)
    value_ref = jnp.dot(h_bf, wc.astype(jnp.bfloat16),
                        preferred_element_type=jnp.float32) + bc

    assert probs.shape == (batch, action_dim) and value.shape == (batch, 1)
    assert jnp.allclose(probs, probs_ref, atol=1e-4, rtol=1e-4)
    assert jnp.allclose(value, value_ref, atol=1e-4, rtol=1e-4)
    # probabilities sum to 1 per row
    assert jnp.allclose(jnp.sum(probs, axis=-1), 1.0, atol=1e-5)

    print("KERNEL_OK")
</pallas_src>

<mosaic_0001>
module attributes {stable_mosaic.version = 11 : i64} {
  func.func @ppo_actor_critic_kernel(%arg0: i32, %arg1: memref<128x32xf32, #tpu.memory_space<vmem>>, %arg2: memref<32x128xbf16, #tpu.memory_space<vmem>>, %arg3: memref<1x128xf32, #tpu.memory_space<vmem>>, %arg4: memref<128x128xbf16, #tpu.memory_space<vmem>>, %arg5: memref<1x128xf32, #tpu.memory_space<vmem>>, %arg6: memref<8x128xf32, #tpu.memory_space<vmem>>) attributes {dimension_semantics = [#tpu.dimension_semantics<parallel>], iteration_bounds = array<i64: 1>, scalar_prefetch = 0 : i64, scratch_operands = 0 : i64, tpu.core_type = #tpu.core_type<tc>, window_params = [{transform_indices = @transform_0, window_bounds = array<i64: 128, 32>}, {pipeline_mode = #tpu.pipeline_mode<synchronous>, transform_indices = @transform_1, window_bounds = array<i64: 32, 128>}, {pipeline_mode = #tpu.pipeline_mode<synchronous>, transform_indices = @transform_2, window_bounds = array<i64: 1, 128>}, {pipeline_mode = #tpu.pipeline_mode<synchronous>, transform_indices = @transform_3, window_bounds = array<i64: 128, 128>}, {pipeline_mode = #tpu.pipeline_mode<synchronous>, transform_indices = @transform_4, window_bounds = array<i64: 1, 128>}, {transform_indices = @transform_5, window_bounds = array<i64: 8, 128>}]} {
    %c0 = arith.constant 0 : index
    %c0_0 = arith.constant 0 : index
    %0 = vector.load %arg1[%c0, %c0_0] : memref<128x32xf32, #tpu.memory_space<vmem>>, vector<128x32xf32>
    %1 = arith.truncf %0 : vector<128x32xf32> to vector<128x32xbf16>
    %c0_1 = arith.constant 0 : index
    %c0_2 = arith.constant 0 : index
    %2 = vector.load %arg2[%c0_1, %c0_2] : memref<32x128xbf16, #tpu.memory_space<vmem>>, vector<32x128xbf16>
    %cst = arith.constant dense<0.000000e+00> : vector<128x128xf32>
    %3 = tpu.matmul %1, %2, %cst {dimension_numbers = #tpu.dot_dimension_numbers<[1], [0], [0], [1], [0, 0, 1, 1], [], []>} : vector<128x32xbf16>, vector<32x128xbf16>, vector<128x128xf32> -> vector<128x128xf32>
    %c0_3 = arith.constant 0 : index
    %c0_4 = arith.constant 0 : index
    %4 = vector.load %arg3[%c0_3, %c0_4] : memref<1x128xf32, #tpu.memory_space<vmem>>, vector<1x128xf32>
    %5 = vector.broadcast %4 : vector<1x128xf32> to vector<128x128xf32>
    %6 = arith.addf %3, %5 : vector<128x128xf32>
    %cst_5 = arith.constant 0.000000e+00 : f32
    %7 = vector.broadcast %cst_5 : f32 to vector<128x128xf32>
    %8 = arith.maximumf %6, %7 : vector<128x128xf32>
    %9 = arith.truncf %8 : vector<128x128xf32> to vector<128x128xbf16>
    %c0_6 = arith.constant 0 : index
    %c0_7 = arith.constant 0 : index
    %10 = vector.load %arg4[%c0_6, %c0_7] : memref<128x128xbf16, #tpu.memory_space<vmem>>, vector<128x128xbf16>
    %cst_8 = arith.constant dense<0.000000e+00> : vector<128x128xf32>
    %11 = tpu.matmul %9, %10, %cst_8 {dimension_numbers = #tpu.dot_dimension_numbers<[1], [0], [0], [1], [0, 0, 1, 1], [], []>} : vector<128x128xbf16>, vector<128x128xbf16>, vector<128x128xf32> -> vector<128x128xf32>
    %c0_9 = arith.constant 0 : index
    %c0_10 = arith.constant 0 : index
    %12 = vector.load %arg5[%c0_9, %c0_10] : memref<1x128xf32, #tpu.memory_space<vmem>>, vector<1x128xf32>
    %13 = vector.broadcast %12 : vector<1x128xf32> to vector<128x128xf32>
    %14 = arith.addf %11, %13 : vector<128x128xf32>
    %15 = tpu.iota {dimensions = array<i32: 1>} : vector<128x128xi32>
    %c4_i32 = arith.constant 4 : i32
    %16 = vector.broadcast %c4_i32 : i32 to vector<128x128xi32>
    %17 = arith.cmpi slt, %15, %16 : vector<128x128xi32>
    %c4_i32_11 = arith.constant 4 : i32
    %18 = vector.broadcast %c4_i32_11 : i32 to vector<128x128xi32>
    %19 = arith.cmpi eq, %15, %18 : vector<128x128xi32>
    %cst_12 = arith.constant 0xFF800000 : f32
    %20 = vector.broadcast %cst_12 : f32 to vector<128x128xf32>
    %21 = arith.select %17, %14, %20 : vector<128x128xi1>, vector<128x128xf32>
    %cst_13 = arith.constant dense<0xFF800000> : vector<128xf32>
    %22 = vector.multi_reduction <maximumf>, %21, %cst_13 [1] : vector<128x128xf32> to vector<128xf32>
    %23 = vector.shape_cast %22 : vector<128xf32> to vector<128x1xf32>
    %24 = vector.broadcast %23 : vector<128x1xf32> to vector<128x128xf32>
    %25 = arith.subf %21, %24 : vector<128x128xf32>
    %26 = math.exp %25 : vector<128x128xf32>
    %cst_14 = arith.constant dense<0.000000e+00> : vector<128xf32>
    %27 = vector.multi_reduction <add>, %26, %cst_14 [1] : vector<128x128xf32> to vector<128xf32>
    %28 = vector.shape_cast %27 : vector<128xf32> to vector<128x1xf32>
    %29 = tpu.reciprocal %28 {approx = true} : vector<128x1xf32> -> vector<128x1xf32>
    %30 = arith.mulf %28, %29 : vector<128x1xf32>
    %cst_15 = arith.constant 2.000000e+00 : f32
    %31 = vector.broadcast %cst_15 : f32 to vector<128x1xf32>
    %32 = arith.subf %31, %30 : vector<128x1xf32>
    %33 = arith.mulf %29, %32 : vector<128x1xf32>
    %34 = vector.broadcast %33 : vector<128x1xf32> to vector<128x128xf32>
    %35 = arith.mulf %26, %34 : vector<128x128xf32>
    %cst_16 = arith.constant 0.000000e+00 : f32
    %36 = vector.broadcast %cst_16 : f32 to vector<128x128xf32>
    %37 = arith.select %19, %14, %36 : vector<128x128xi1>, vector<128x128xf32>
    %38 = arith.addf %35, %37 : vector<128x128xf32>
    %39 = tpu.transpose %38, [1, 0] : vector<128x128xf32> -> vector<128x128xf32>
    %40 = vector.extract_strided_slice %39 {offsets = [0, 0], sizes = [8, 128], strides = [1, 1]} : vector<128x128xf32> to vector<8x128xf32>
    %c0_17 = arith.constant 0 : index
    %c0_18 = arith.constant 0 : index
    %41 = vector.load %arg6[%c0_17, %c0_18] : memref<8x128xf32, #tpu.memory_space<vmem>>, vector<8x128xf32>
    tpu.vector_store %arg6[%c0_17, %c0_18], %40 {strides = array<i32>} : memref<8x128xf32, #tpu.memory_space<vmem>>, vector<8x128xf32>,
    return
  }
  func.func @transform_0(%arg0: i32) -> (i32, i32) {
    %c0_i32 = arith.constant 0 : i32
    %c0_i32_0 = arith.constant 0 : i32
    return %arg0, %c0_i32 : i32, i32
  }
  func.func @transform_1(%arg0: i32) -> (i32, i32) {
    %c0_i32 = arith.constant 0 : i32
    %c0_i32_0 = arith.constant 0 : i32
    %c0_i32_1 = arith.constant 0 : i32
    return %c0_i32, %c0_i32_0 : i32, i32
  }
  func.func @transform_2(%arg0: i32) -> (i32, i32) {
    %c0_i32 = arith.constant 0 : i32
    %c0_i32_0 = arith.constant 0 : i32
    %c0_i32_1 = arith.constant 0 : i32
    return %c0_i32, %c0_i32_0 : i32, i32
  }
  func.func @transform_3(%arg0: i32) -> (i32, i32) {
    %c0_i32 = arith.constant 0 : i32
    %c0_i32_0 = arith.constant 0 : i32
    %c0_i32_1 = arith.constant 0 : i32
    return %c0_i32, %c0_i32_0 : i32, i32
  }
  func.func @transform_4(%arg0: i32) -> (i32, i32) {
    %c0_i32 = arith.constant 0 : i32
    %c0_i32_0 = arith.constant 0 : i32
    %c0_i32_1 = arith.constant 0 : i32
    return %c0_i32, %c0_i32_0 : i32, i32
  }
  func.func @transform_5(%arg0: i32) -> (i32, i32) {
    %c0_i32 = arith.constant 0 : i32
    %c0_i32_0 = arith.constant 0 : i32
    return %c0_i32, %arg0 : i32, i32
  }
}

</mosaic_0001>

<bundles_post_ra>
// kernel: tpu_custom_call.1
= control target key start
LH: loop header
LB: loop body
LE: loop exit
PB: predicated region body
PF: predicated region fallthrough
CT: control target
= control target key end

     0   :  { %s1135_s0 = inlined_call_operand.vmem [shape: f32[128,32], index: 0, kind: input, shape index: {}]   ;;  %s1136_s1 = inlined_call_operand.vmem [shape: bf16[32,128], index: 1, kind: input, shape index: {}]   ;;  %s1137_s2 = inlined_call_operand.vmem [shape: f32[1,128], index: 2, kind: input, shape index: {}]   ;;  %s1138_s3 = inlined_call_operand.vmem [shape: bf16[128,128], index: 3, kind: input, shape index: {}]   ;;  %s1139_s4 = inlined_call_operand.vmem [shape: f32[1,128], index: 4, kind: input, shape index: {}]   ;;  %s1140_s5 = inlined_call_operand.hbm [shape: f32[8,128], index: 5, kind: output, shape index: {}]  }
   0x1   :  { %v623_v0 = vld [vmem:[%s1136_s1 + $0x8] sm:$0xff]  ;;  %v622_v1 = vld [vmem:[%s1136_s1] sm:$0xff] }
   0x2   :  { %97 = vmatpush.bf16.msra.mxu0 %v623_v0  ;;  %v22_v2 = vld [vmem:[%s1135_s0] sm:$0xff]  ;;  %v23_v3 = vld [vmem:[%s1135_s0 + $0x8] sm:$0xff]  ;;  %632 = vmatpush.bf16.msra.mxu3 %v623_v0 }
   0x3   :  { %10 = vsyncpa [#allocation3], 0  ;;  %v38_v4 = vpack.c.bf16 %v23_v3, %v22_v2  ;;  %vm66_vm0 = vcmask 261120   ;;  %v24_v5 = vld [vmem:[%s1135_s0 + $0x10] sm:$0xff]  ;;  %v25_v6 = vld [vmem:[%s1135_s0 + $0x18] sm:$0xff]  ;;  %s565_s22 = sshll.u32 %s1140_s5, 4  ;;  %s566_s22 = int_to_ptr.hbm [resolvable:$true] %s565_s22 }
   0x4   :  { %v39_v7 = vpack.c.bf16 %v25_v6, %v24_v5  ;;  %v26_v8 = vld [vmem:[%s1135_s0 + $0x20] sm:$0xff]  ;;  %v27_v9 = vld [vmem:[%s1135_s0 + $0x28] sm:$0xff]  ;;  %v32_v11 = vld [vmem:[%s1135_s0 + $0x50] sm:$0xff] }
   0x5   :  { %v40_v10 = vpack.c.bf16 %v27_v9, %v26_v8  ;;  %v33_v12 = vld [vmem:[%s1135_s0 + $0x58] sm:$0xff]  ;;  %v630_v15 = vld [vmem:[%s1138_s3 + $0x30] sm:$0xff]  ;;  %v629_v16 = vld [vmem:[%s1138_s3 + $0x28] sm:$0xff] }
   0x6   :  { %98 = vmatpush.bf16.msra.mxu0 %v622_v1  ;;  %633 = vmatpush.bf16.msra.mxu3 %v622_v1  ;;  %v43_v13 = vpack.c.bf16 %v33_v12, %v32_v11  ;;  %v631_v14 = vld [vmem:[%s1138_s3 + $0x38] sm:$0xff]  ;;  %v28_v17 = vld [vmem:[%s1135_s0 + $0x30] sm:$0xff]  ;;  %v34_v19 = vld [vmem:[%s1135_s0 + $0x60] sm:$0xff] }
   0x7   :  { %232 = vmatpush.bf16.msra.mxu1 %v631_v14  ;;  %634 = vmatpush.bf16.msra.mxu2 %v631_v14  ;;  %v29_v18 = vld [vmem:[%s1135_s0 + $0x38] sm:$0xff]  ;;  %v35_v20 = vld [vmem:[%s1135_s0 + $0x68] sm:$0xff]  ;;  %v628_v22 = vld [vmem:[%s1138_s3 + $0x20] sm:$0xff] }
   0x8   :  { %v41_v21 = vpack.c.bf16 %v29_v18, %v28_v17  ;;  %v44_v23 = vpack.c.bf16 %v35_v20, %v34_v19  ;;  %v30_v24 = vld [vmem:[%s1135_s0 + $0x40] sm:$0xff]  ;;  %v31_v25 = vld [vmem:[%s1135_s0 + $0x48] sm:$0xff]  ;;  %v36_v26 = vld [vmem:[%s1135_s0 + $0x70] sm:$0xff] }
   0x9   :  { %582 = vmatmul.msk.bf16.vlgmr.msra.gmra.mxu0 %vm66_vm0, %v38_v4  ;;  %587 = vmatmul.msk.bf16.vlgmr.msra.gmra.mxu3 %vm66_vm0, %v43_v13  ;;  %v37_v27 = vld [vmem:[%s1135_s0 + $0x78] sm:$0xff]  ;;  %v42_v28 = vpack.c.bf16 %v31_v25, %v30_v24  ;;  %v626_v31 = vld [vmem:[%s1138_s3 + $0x10] sm:$0xff]  ;;  %v625_v32 = vld [vmem:[%s1138_s3 + $0x8] sm:$0xff] }
   0xa   :  { %v45_v29 = vpack.c.bf16 %v37_v27, %v36_v26  ;;  %v627_v30 = vld [vmem:[%s1138_s3 + $0x18] sm:$0xff]  ;;  %v624_v33 = vld [vmem:[%s1138_s3] sm:$0xff]  ;;  %v281_v27 = vlaneseq }
   0xb   :  { %233 = vmatpush.bf16.msra.mxu1 %v630_v15  ;;  %635 = vmatpush.bf16.msra.mxu2 %v630_v15  ;;  %v643_v35 = vld [vmem:[%s1137_s2] ss:$0 sm:$0xff] }
   0xf   :  { %234 = vmatpush.bf16.msra.mxu1 %v629_v16  ;;  %636 = vmatpush.bf16.msra.mxu2 %v629_v16 }
  0x13   :  { %235 = vmatpush.bf16.msra.mxu1 %v628_v22  ;;  %637 = vmatpush.bf16.msra.mxu2 %v628_v22 }
  0x17   :  { %236 = vmatpush.bf16.msra.mxu1 %v627_v30  ;;  %638 = vmatpush.bf16.msra.mxu2 %v627_v30 }
  0x19   :  { %583 = vmatmul.msk.bf16.gmra.mxu0 %vm66_vm0, %v39_v7  ;;  %588 = vmatmul.msk.bf16.gmra.mxu3 %vm66_vm0, %v44_v23 }
  0x1b   :  { %237 = vmatpush.bf16.msra.mxu1 %v626_v31  ;;  %639 = vmatpush.bf16.msra.mxu2 %v626_v31 }
  0x1f   :  { %238 = vmatpush.bf16.msra.mxu1 %v625_v32  ;;  %640 = vmatpush.bf16.msra.mxu2 %v625_v32 }
  0x23   :  { %239 = vmatpush.bf16.msra.mxu1 %v624_v33  ;;  %641 = vmatpush.bf16.msra.mxu2 %v624_v33 }
  0x29   :  { %584 = vmatmul.msk.bf16.gmra.mxu0 %vm66_vm0, %v40_v10  ;;  %589 = vmatmul.msk.bf16.gmra.mxu3 %vm66_vm0, %v45_v29  ;;  %v860_v29 = vld [vmem:[%s1139_s4] ss:$0 sm:$0xff]  ;;  %s735_s4 = smov [#allocation2]  }
  0x2a   :  { %s563_s19 = sshll.u32 %s735_s4, 4  ;;  %s564_s19 = int_to_ptr.vmem [resolvable:$true] %s563_s19 }
  0x39   :  { %585 = vmatmul.msk.bf16.gmra.mxu0 %vm66_vm0, %v41_v21 }
  0x49   :  { %586 = vmatmul.msk.bf16.gmra.mxu0 %vm66_vm0, %v42_v28  ;;  %v855_v28 = vand.u32 127, %v281_v27 }
  0x4b   :  { %vm283_vm1 = vcmp.lt.s32.totalorder %v855_v28, 4  ;;  %vm284_vm2 = vcmp.eq.s32.totalorder %v855_v28, 4 }
  0x86   :  { %v100_v34 = vpop.f32.mrf.mxu0 }
  0x87   :  { %v101_v36 = vadd.f32 %v643_v35, %v100_v34 }
  0x89   :  { %v140_v39 = vmax.f32 %v101_v36, 0.0 }
  0x8c   :  { %v125_v0 = vpop.f32.mrf.mxu3 }
  0x8d   :  { %v126_v9 = vadd.f32 %v643_v35, %v125_v0 }
  0x8e   :  { %v102_v37 = vpop.f32.mrf.mxu0 }
  0x8f   :  { %v103_v38 = vadd.f32 %v643_v35, %v102_v37  ;;  %v150_v11 = vmax.f32 %v126_v9, 0.0 }
  0x91   :  { %v141_v40 = vmax.f32 %v103_v38, 0.0 }
  0x93   :  { %v156_v41 = vpack.c.bf16 %v141_v40, %v140_v39 }
  0x94   :  { %v127_v4 = vpop.f32.mrf.mxu3 }
  0x95   :  { %240 = vmatmul.bf16.vlgmr.msra.gmra.mxu1 %v156_v41  ;;  %v128_v10 = vadd.f32 %v643_v35, %v127_v4 }
  0x96   :  { %v105_v42 = vpop.f32.mrf.mxu0 }
  0x97   :  { %v106_v43 = vadd.f32 %v643_v35, %v105_v42  ;;  %v151_v12 = vmax.f32 %v128_v10, 0.0 }
  0x99   :  { %v142_v46 = vmax.f32 %v106_v43, 0.0  ;;  %v161_v13 = vpack.c.bf16 %v151_v12, %v150_v11 }
  0x9c   :  { %v130_v8 = vpop.f32.mrf.mxu3 }
  0x9d   :  { %v131_v15 = vadd.f32 %v643_v35, %v130_v8 }
  0x9e   :  { %v107_v44 = vpop.f32.mrf.mxu0 }
  0x9f   :  { %v108_v45 = vadd.f32 %v643_v35, %v107_v44  ;;  %v152_v18 = vmax.f32 %v131_v15, 0.0 }
  0xa1   :  { %v143_v47 = vmax.f32 %v108_v45, 0.0 }
  0xa3   :  { %v157_v48 = vpack.c.bf16 %v143_v47, %v142_v46 }
  0xa4   :  { %v132_v14 = vpop.f32.mrf.mxu3 }
  0xa5   :  { %245 = vmatmul.bf16.gmra.mxu1 %v157_v48  ;;  %v133_v16 = vadd.f32 %v643_v35, %v132_v14 }
  0xa6   :  { %v110_v49 = vpop.f32.mrf.mxu0 }
  0xa7   :  { %v111_v50 = vadd.f32 %v643_v35, %v110_v49  ;;  %v153_v19 = vmax.f32 %v133_v16, 0.0 }
  0xa9   :  { %v144_v53 = vmax.f32 %v111_v50, 0.0  ;;  %v162_v20 = vpack.c.bf16 %v153_v19, %v152_v18 }
  0xac   :  { %v135_v17 = vpop.f32.mrf.mxu3 }
  0xad   :  { %v136_v22 = vadd.f32 %v643_v35, %v135_v17 }
  0xae   :  { %v112_v51 = vpop.f32.mrf.mxu0 }
  0xaf   :  { %v113_v52 = vadd.f32 %v643_v35, %v112_v51  ;;  %v154_v24 = vmax.f32 %v136_v22, 0.0 }
  0xb1   :  { %v145_v54 = vmax.f32 %v113_v52, 0.0 }
  0xb3   :  { %v158_v55 = vpack.c.bf16 %v145_v54, %v144_v53 }
  0xb4   :  { %v137_v21 = vpop.f32.mrf.mxu3 }
  0xb5   :  { %250 = vmatmul.bf16.gmra.mxu1 %v158_v55  ;;  %v138_v23 = vadd.f32 %v643_v35, %v137_v21 }
  0xb6   :  { %v115_v56 = vpop.f32.mrf.mxu0 }
  0xb7   :  { %v116_v57 = vadd.f32 %v643_v35, %v115_v56  ;;  %v155_v25 = vmax.f32 %v138_v23, 0.0 }
  0xb9   :  { %v146_v60 = vmax.f32 %v116_v57, 0.0  ;;  %v163_v26 = vpack.c.bf16 %v155_v25, %v154_v24 }
  0xbe   :  { %v117_v58 = vpop.f32.mrf.mxu0 }
  0xbf   :  { %v118_v59 = vadd.f32 %v643_v35, %v117_v58 }
  0xc1   :  { %v147_v61 = vmax.f32 %v118_v59, 0.0 }
  0xc3   :  { %v159_v62 = vpack.c.bf16 %v147_v61, %v146_v60 }
  0xc5   :  { %255 = vmatmul.bf16.gmra.mxu1 %v159_v62 }
  0xc6   :  { %v120_v63 = vpop.f32.mrf.mxu0 }
  0xc7   :  { %v121_v1 = vadd.f32 %v643_v35, %v120_v63 }
  0xc9   :  { %v148_v5 = vmax.f32 %v121_v1, 0.0 }
  0xce   :  { %v122_v2 = vpop.f32.mrf.mxu0 }
  0xcf   :  { %v123_v3 = vadd.f32 %v643_v35, %v122_v2 }
  0xd1   :  { %v149_v6 = vmax.f32 %v123_v3, 0.0 }
  0xd3   :  { %v160_v7 = vpack.c.bf16 %v149_v6, %v148_v5 }
  0xd5   :  { %260 = vmatmul.bf16.vlgmr.msra.gmra.mxu2 %v160_v7 }
  0xe5   :  { %265 = vmatmul.bf16.gmra.mxu2 %v161_v13 }
  0xf5   :  { %270 = vmatmul.bf16.gmra.mxu2 %v162_v20 }
 0x105   :  { %275 = vmatmul.bf16.gmra.mxu2 %v163_v26 }
 0x112   :  { %v241_v30 = vpop.f32.mrf.mxu1 }
 0x113   :  { %v864_v31 = vadd.f32 %v860_v29, %v241_v30 }
 0x115   :  { %v285_v32 = vsel %vm283_vm1, %v864_v31, -inf }
 0x116   :  { %301 = vmax.xlane.f32.xlu0 %v285_v32 }
 0x11a   :  { %v243_v33 = vpop.f32.mrf.mxu1 }
 0x11b   :  { %v870_v34 = vadd.f32 %v860_v29, %v243_v33 }
 0x11d   :  { %v875_v35 = vsel %vm283_vm1, %v870_v34, -inf }
 0x11e   :  { %303 = vmax.xlane.f32.xlu0 %v875_v35 }
 0x122   :  { %v246_v36 = vpop.f32.mrf.mxu1 }
 0x123   :  { %v879_v37 = vadd.f32 %v860_v29, %v246_v36 }
 0x125   :  { %v884_v38 = vsel %vm283_vm1, %v879_v37, -inf }
 0x126   :  { %305 = vmax.xlane.f32.xlu1 %v884_v38 }
 0x12a   :  { %v248_v39 = vpop.f32.mrf.mxu1 }
 0x12b   :  { %v888_v40 = vadd.f32 %v860_v29, %v248_v39 }
 0x12d   :  { %v893_v41 = vsel %vm283_vm1, %v888_v40, -inf }
 0x12e   :  { %307 = vmax.xlane.f32.xlu1 %v893_v41 }
 0x132   :  { %v251_v42 = vpop.f32.mrf.mxu1 }
 0x133   :  { %v897_v43 = vadd.f32 %v860_v29, %v251_v42 }
 0x135   :  { %v902_v44 = vsel %vm283_vm1, %v897_v43, -inf }
 0x136   :  { %309 = vmax.xlane.f32.xlu2 %v902_v44 }
 0x13a   :  { %v253_v45 = vpop.f32.mrf.mxu1 }
 0x13b   :  { %v906_v46 = vadd.f32 %v860_v29, %v253_v45 }
 0x13d   :  { %v911_v47 = vsel %vm283_vm1, %v906_v46, -inf }
 0x13e   :  { %311 = vmax.xlane.f32.xlu2 %v911_v47 }
 0x142   :  { %v256_v48 = vpop.f32.mrf.mxu1 }
 0x143   :  { %v915_v49 = vadd.f32 %v860_v29, %v256_v48 }
 0x145   :  { %v920_v50 = vsel %vm283_vm1, %v915_v49, -inf }
 0x146   :  { %313 = vmax.xlane.f32.xlu0 %v920_v50 }
 0x14a   :  { %v258_v51 = vpop.f32.mrf.mxu1 }
 0x14b   :  { %v924_v52 = vadd.f32 %v860_v29, %v258_v51 }
 0x14d   :  { %v929_v53 = vsel %vm283_vm1, %v924_v52, -inf }
 0x14e   :  { %315 = vmax.xlane.f32.xlu1 %v929_v53 }
 0x158   :  { %v261_v54 = vpop.f32.mrf.mxu2 }
 0x159   :  { %v933_v55 = vadd.f32 %v860_v29, %v261_v54 }
 0x15b   :  { %v938_v56 = vsel %vm283_vm1, %v933_v55, -inf }
 0x15c   :  { %317 = vmax.xlane.f32.xlu2 %v938_v56 }
 0x160   :  { %v263_v57 = vpop.f32.mrf.mxu2 }
 0x161   :  { %v942_v58 = vadd.f32 %v860_v29, %v263_v57 }
 0x163   :  { %v947_v59 = vsel %vm283_vm1, %v942_v58, -inf }
 0x164   :  { %319 = vmax.xlane.f32.xlu0 %v947_v59 }
 0x168   :  { %v266_v60 = vpop.f32.mrf.mxu2 }
 0x169   :  { %v951_v61 = vadd.f32 %v860_v29, %v266_v60 }
 0x16b   :  { %v956_v62 = vsel %vm283_vm1, %v951_v61, -inf }
 0x16c   :  { %321 = vmax.xlane.f32.xlu1 %v956_v62 }
 0x170   :  { %v268_v63 = vpop.f32.mrf.mxu2 }
 0x171   :  { %v960_v0 = vadd.f32 %v860_v29, %v268_v63 }
 0x173   :  { %v965_v1 = vsel %vm283_vm1, %v960_v0, -inf }
 0x174   :  { %323 = vmax.xlane.f32.xlu2 %v965_v1 }
 0x178   :  { %v271_v2 = vpop.f32.mrf.mxu2 }
 0x179   :  { %v969_v3 = vadd.f32 %v860_v29, %v271_v2 }
 0x17b   :  { %v974_v4 = vsel %vm283_vm1, %v969_v3, -inf }
 0x17c   :  { %325 = vmax.xlane.f32.xlu0 %v974_v4 }
 0x180   :  { %v273_v5 = vpop.f32.mrf.mxu2 }
 0x181   :  { %v978_v6 = vadd.f32 %v860_v29, %v273_v5 }
 0x183   :  { %v983_v7 = vsel %vm283_vm1, %v978_v6, -inf }
 0x184   :  { %327 = vmax.xlane.f32.xlu1 %v983_v7 }
 0x188   :  { %v276_v8 = vpop.f32.mrf.mxu2 }
 0x189   :  { %v987_v9 = vadd.f32 %v860_v29, %v276_v8  ;;  %v302_v10 = vpop.xlane.xlu0 %301 }
 0x18a   :  { %v333_v11 = vsub.f32 %v285_v32, %v302_v10 }
 0x18b   :  { %v992_v12 = vsel %vm283_vm1, %v987_v9, -inf }
 0x18c   :  { %v349_v13 = vmul.f32 1.442695, %v333_v11  ;;  %329 = vmax.xlane.f32.xlu2 %v992_v12 }
 0x18e   :  { %645 = vpow2.f32 %v349_v13 }
 0x190   :  { %v278_v14 = vpop.f32.mrf.mxu2 }
 0x191   :  { %v996_v15 = vadd.f32 %v860_v29, %v278_v14  ;;  %v304_v16 = vpop.xlane.xlu0 %303 }
 0x192   :  { %v334_v17 = vsub.f32 %v875_v35, %v304_v16 }
 0x193   :  { %v1002_v18 = vsel %vm283_vm1, %v996_v15, -inf }
 0x194   :  { %v1004_v19 = vpop.eup %645  ;;  %v351_v20 = vmul.f32 1.442695, %v334_v17  ;;  %331 = vmax.xlane.f32.xlu0 %v1002_v18 }
 0x195   :  { %381 = vadd.xlane.f32.xlu1 %v1004_v19 }
 0x196   :  { %647 = vpow2.f32 %v351_v20 }
 0x199   :  { %v306_v21 = vpop.xlane.xlu1 %305 }
 0x19a   :  { %v335_v22 = vsub.f32 %v884_v38, %v306_v21 }
 0x19c   :  { %v1009_v23 = vpop.eup %647  ;;  %v353_v24 = vmul.f32 1.442695, %v335_v22 }
 0x19d   :  { %383 = vadd.xlane.f32.xlu2 %v1009_v23 }
 0x19e   :  { %649 = vpow2.f32 %v353_v24 }
 0x1a1   :  { %v308_v25 = vpop.xlane.xlu1 %307 }
 0x1a2   :  { %v336_v26 = vsub.f32 %v893_v41, %v308_v25 }
 0x1a4   :  { %v1013_v27 = vpop.eup %649  ;;  %v355_v29 = vmul.f32 1.442695, %v336_v26 }
 0x1a5   :  { %385 = vadd.xlane.f32.xlu0 %v1013_v27 }
 0x1a6   :  { %651 = vpow2.f32 %v355_v29 }
 0x1a9   :  { %v310_v30 = vpop.xlane.xlu2 %309 }
 0x1aa   :  { %v337_v32 = vsub.f32 %v902_v44, %v310_v30 }
 0x1ac   :  { %v1017_v33 = vpop.eup %651  ;;  %v357_v35 = vmul.f32 1.442695, %v337_v32 }
 0x1ad   :  { %387 = vadd.xlane.f32.xlu1 %v1017_v33 }
 0x1ae   :  { %653 = vpow2.f32 %v357_v35 }
 0x1b1   :  { %v312_v36 = vpop.xlane.xlu2 %311 }
 0x1b2   :  { %v338_v38 = vsub.f32 %v911_v47, %v312_v36 }
 0x1b4   :  { %v1021_v39 = vpop.eup %653  ;;  %v359_v41 = vmul.f32 1.442695, %v338_v38 }
 0x1b5   :  { %389 = vadd.xlane.f32.xlu2 %v1021_v39 }
 0x1b6   :  { %655 = vpow2.f32 %v359_v41 }
 0x1b9   :  { %v314_v42 = vpop.xlane.xlu0 %313 }
 0x1ba   :  { %v339_v45 = vsub.f32 %v920_v50, %v314_v42 }
 0x1bc   :  { %v1025_v48 = vpop.eup %655  ;;  %v361_v44 = vmul.f32 1.442695, %v339_v45 }
 0x1bd   :  { %391 = vadd.xlane.f32.xlu0 %v1025_v48 }
 0x1be   :  { %657 = vpow2.f32 %v361_v44 }
 0x1c1   :  { %v316_v51 = vpop.xlane.xlu1 %315 }
 0x1c2   :  { %v340_v54 = vsub.f32 %v929_v53, %v316_v51 }
 0x1c4   :  { %v1029_v57 = vpop.eup %657  ;;  %v363_v47 = vmul.f32 1.442695, %v340_v54 }
 0x1c5   :  { %393 = vadd.xlane.f32.xlu1 %v1029_v57 }
 0x1c6   :  { %659 = vpow2.f32 %v363_v47 }
 0x1cc   :  { %v1032_v60 = vpop.eup %659 }
 0x1cd   :  { %395 = vadd.xlane.f32.xlu2 %v1032_v60 }
 0x1cf   :  { %v318_v50 = vpop.xlane.xlu2 %317 }
 0x1d0   :  { %v341_v63 = vsub.f32 %v938_v56, %v318_v50 }
 0x1d2   :  { %v365_v2 = vmul.f32 1.442695, %v341_v63 }
 0x1d4   :  { %661 = vpow2.f32 %v365_v2 }
 0x1d7   :  { %v320_v5 = vpop.xlane.xlu0 %319 }
 0x1d8   :  { %v342_v8 = vsub.f32 %v947_v59, %v320_v5 }
 0x1da   :  { %v1037_v10 = vpop.eup %661  ;;  %v367_v53 = vmul.f32 1.442695, %v342_v8 }
 0x1db   :  { %397 = vadd.xlane.f32.xlu0 %v1037_v10 }
 0x1dc   :  { %663 = vpow2.f32 %v367_v53 }
 0x1df   :  { %v322_v11 = vpop.xlane.xlu1 %321 }
 0x1e0   :  { %v343_v13 = vsub.f32 %v956_v62, %v322_v11  ;;  %v493_v11 = vsel %vm284_vm2, %v864_v31, 0.0 }
 0x1e2   :  { %v1041_v14 = vpop.eup %663  ;;  %v369_v16 = vmul.f32 1.442695, %v343_v13 }
 0x1e3   :  { %399 = vadd.xlane.f32.xlu1 %v1041_v14 }
 0x1e4   :  { %665 = vpow2.f32 %v369_v16 }
 0x1e7   :  { %v324_v56 = vpop.xlane.xlu2 %323 }
 0x1e8   :  { %v344_v17 = vsub.f32 %v965_v1, %v324_v56 }
 0x1ea   :  { %v1045_v20 = vpop.eup %665  ;;  %v371_v59 = vmul.f32 1.442695, %v344_v17 }
 0x1eb   :  { %401 = vadd.xlane.f32.xlu2 %v1045_v20 }
 0x1ec   :  { %667 = vpow2.f32 %v371_v59 }
 0x1ef   :  { %v326_v21 = vpop.xlane.xlu0 %325 }
 0x1f0   :  { %v345_v22 = vsub.f32 %v974_v4, %v326_v21 }
 0x1f2   :  { %v1049_v24 = vpop.eup %667  ;;  %v373_v62 = vmul.f32 1.442695, %v345_v22 }
 0x1f3   :  { %403 = vadd.xlane.f32.xlu0 %v1049_v24 }
 0x1f4   :  { %669 = vpow2.f32 %v373_v62  ;;  %v494_v62 = vsel %vm284_vm2, %v870_v34, 0.0 }
 0x1f7   :  { %v328_v25 = vpop.xlane.xlu1 %327 }
 0x1f8   :  { %v346_v26 = vsub.f32 %v983_v7, %v328_v25 }
 0x1fa   :  { %v1053_v29 = vpop.eup %669  ;;  %v375_v1 = vmul.f32 1.442695, %v346_v26 }
 0x1fb   :  { %405 = vadd.xlane.f32.xlu1 %v1053_v29 }
 0x1fc   :  { %671 = vpow2.f32 %v375_v1 }
 0x1ff   :  { %v330_v30 = vpop.xlane.xlu2 %329 }
 0x200   :  { %v347_v32 = vsub.f32 %v992_v12, %v330_v30 }
 0x202   :  { %v1057_v35 = vpop.eup %671  ;;  %v377_v4 = vmul.f32 1.442695, %v347_v32 }
 0x203   :  { %407 = vadd.xlane.f32.xlu2 %v1057_v35 }
 0x204   :  { %673 = vpow2.f32 %v377_v4  ;;  %v495_v4 = vsel %vm284_vm2, %v879_v37, 0.0 }
 0x207   :  { %v332_v36 = vpop.xlane.xlu0 %331 }
 0x208   :  { %v348_v38 = vsub.f32 %v1002_v18, %v332_v36  ;;  %v382_v42 = vpop.xlane.xlu1 %381 }
 0x20a   :  { %v1061_v41 = vpop.eup %673  ;;  %v379_v7 = vmul.f32 1.442695, %v348_v38 }
 0x20b   :  { %409 = vadd.xlane.f32.xlu0 %v1061_v41 }
 0x20c   :  { %675 = vpow2.f32 %v379_v7 }
 0x20d   :  { %677 = vrcp.f32 %v382_v42 }
 0x210   :  { %v384_v12 = vpop.xlane.xlu2 %383 }
 0x211   :  { %679 = vrcp.f32 %v384_v12 }
 0x212   :  { %v1064_v45 = vpop.eup %675 }
 0x213   :  { %411 = vadd.xlane.f32.xlu1 %v1064_v45  ;;  %v678_v44 = vpop.eup %677 }
 0x214   :  { %v429_v51 = vmul.f32 %v678_v44, %v382_v42 }
 0x216   :  { %v445_v54 = vsub.f32 2.0, %v429_v51 }
 0x217   :  { %v680_v50 = vpop.eup %679 }
 0x218   :  { %v386_v47 = vpop.xlane.xlu0 %385  ;;  %v461_v18 = vmul.f32 %v678_v44, %v445_v54  ;;  %v430_v63 = vmul.f32 %v680_v50, %v384_v12  ;;  %v496_v44 = vsel %vm284_vm2, %v888_v40, 0.0 }
 0x219   :  { %681 = vrcp.f32 %v386_v47 }
 0x21a   :  { %v446_v2 = vsub.f32 2.0, %v430_v63  ;;  %v477_v8 = vmul.f32 %v1004_v19, %v461_v18  ;;  %v497_v63 = vsel %vm284_vm2, %v897_v43, 0.0 }
 0x21c   :  { %v462_v13 = vmul.f32 %v680_v50, %v446_v2  ;;  %v509_v56 = vadd.f32 %v493_v11, %v477_v8 }
 0x21e   :  { %v478_v21 = vmul.f32 %v1009_v23, %v462_v13  ;;  %v498_v13 = vsel %vm284_vm2, %v906_v46, 0.0 }
 0x21f   :  { %v682_v53 = vpop.eup %681 }
 0x220   :  { %v388_v5 = vpop.xlane.xlu1 %387  ;;  %v431_v16 = vmul.f32 %v682_v53, %v386_v47  ;;  %v510_v26 = vadd.f32 %v494_v62, %v478_v21 }
 0x221   :  { %683 = vrcp.f32 %v388_v5 }
 0x222   :  { %v447_v17 = vsub.f32 2.0, %v431_v16 }
 0x224   :  { %v463_v19 = vmul.f32 %v682_v53, %v447_v17 }
 0x226   :  { %v479_v30 = vmul.f32 %v1013_v27, %v463_v19 }
 0x227   :  { %v684_v22 = vpop.eup %683 }
 0x228   :  { %v390_v59 = vpop.xlane.xlu2 %389  ;;  %v432_v25 = vmul.f32 %v684_v22, %v388_v5  ;;  %v511_v38 = vadd.f32 %v495_v4, %v479_v30 }
 0x229   :  { %685 = vrcp.f32 %v390_v59 }
 0x22a   :  { %v448_v1 = vsub.f32 2.0, %v432_v25 }
 0x22c   :  { %525 = vxpose.xlu2.b32.start [1/16] (narrow) %v509_v56, 8  ;;  %v464_v23 = vmul.f32 %v684_v22, %v448_v1  ;;  %v499_v22 = vsel %vm284_vm2, %v915_v49, 0.0 }
 0x22e   :  { %v480_v42 = vmul.f32 %v1017_v33, %v464_v23 }
 0x22f   :  { %v686_v32 = vpop.eup %685 }
 0x230   :  { %v392_v31 = vpop.xlane.xlu0 %391  ;;  %v433_v36 = vmul.f32 %v686_v32, %v390_v59  ;;  %v512_v54 = vadd.f32 %v496_v44, %v480_v42 }
 0x231   :  { %687 = vrcp.f32 %v392_v31 }
 0x232   :  { %v449_v34 = vsub.f32 2.0, %v433_v36 }
 0x234   :  { %526 = vxpose.xlu2.b32.cont [2/16] (narrow) %v510_v26, 8  ;;  %v465_v27 = vmul.f32 %v686_v32, %v449_v34 }
 0x236   :  { %v481_v50 = vmul.f32 %v1021_v39, %v465_v27  ;;  %v502_v27 = vsel %vm284_vm2, %v942_v58, 0.0 }
 0x237   :  { %v688_v12 = vpop.eup %687 }
 0x238   :  { %v394_v7 = vpop.xlane.xlu1 %393  ;;  %v434_v51 = vmul.f32 %v688_v12, %v392_v31  ;;  %v513_v5 = vadd.f32 %v497_v63, %v481_v50  ;;  %v500_v31 = vsel %vm284_vm2, %v924_v52, 0.0 }
 0x239   :  { %689 = vrcp.f32 %v394_v7 }
 0x23a   :  { %v450_v37 = vsub.f32 2.0, %v434_v51 }
 0x23c   :  { %527 = vxpose.xlu2.b32.cont [3/16] (narrow) %v511_v38, 8  ;;  %v466_v33 = vmul.f32 %v688_v12, %v450_v37  ;;  %v501_v38 = vsel %vm284_vm2, %v933_v55, 0.0 }
 0x23e   :  { %v482_v53 = vmul.f32 %v1025_v48, %v466_v33 }
 0x23f   :  { %v690_v18 = vpop.eup %689 }
 0x240   :  { %v396_v47 = vpop.xlane.xlu2 %395  ;;  %v435_v2 = vmul.f32 %v690_v18, %v394_v7  ;;  %v514_v56 = vadd.f32 %v498_v13, %v482_v53 }
 0x241   :  { %691 = vrcp.f32 %v396_v47 }
 0x242   :  { %v451_v40 = vsub.f32 2.0, %v435_v2 }
 0x244   :  { %528 = vxpose.xlu2.b32.cont [4/16] (narrow) %v512_v54, 8  ;;  %v467_v39 = vmul.f32 %v690_v18, %v451_v40  ;;  %v503_v18 = vsel %vm284_vm2, %v951_v61, 0.0 }
 0x246   :  { %v483_v59 = vmul.f32 %v1029_v57, %v467_v39 }
 0x247   :  { %v692_v11 = vpop.eup %691 }
 0x248   :  { %v436_v16 = vmul.f32 %v692_v11, %v396_v47  ;;  %v515_v19 = vadd.f32 %v499_v22, %v483_v59  ;;  %v506_v22 = vsel %vm284_vm2, %v978_v6, 0.0  ;;  %v508_v6 = vsel %vm284_vm2, %v996_v15, 0.0 }
 0x24a   :  { %v452_v43 = vsub.f32 2.0, %v436_v16 }
 0x24c   :  { %529 = vxpose.xlu2.b32.cont [5/16] (narrow) %v513_v5, 8  ;;  %v468_v48 = vmul.f32 %v692_v11, %v452_v43 }
 0x24e   :  { %v398_v8 = vpop.xlane.xlu0 %397  ;;  %v484_v26 = vmul.f32 %v1032_v60, %v468_v48 }
 0x24f   :  { %693 = vrcp.f32 %v398_v8 }
 0x250   :  { %v516_v32 = vadd.f32 %v500_v31, %v484_v26 }
 0x254   :  { %530 = vxpose.xlu2.b32.cont [6/16] (narrow) %v514_v56, 8  ;;  %v505_v56 = vsel %vm284_vm2, %v969_v3, 0.0 }
 0x255   :  { %v694_v21 = vpop.eup %693 }
 0x256   :  { %v400_v17 = vpop.xlane.xlu1 %399  ;;  %v437_v62 = vmul.f32 %v694_v21, %v398_v8  ;;  %v504_v8 = vsel %vm284_vm2, %v960_v0, 0.0 }
 0x257   :  { %695 = vrcp.f32 %v400_v17 }
 0x258   :  { %v453_v46 = vsub.f32 2.0, %v437_v62 }
 0x25a   :  { %v469_v57 = vmul.f32 %v694_v21, %v453_v46  ;;  %v507_v46 = vsel %vm284_vm2, %v987_v9, 0.0 }
 0x25c   :  { %531 = vxpose.xlu2.b32.cont [7/16] (narrow) %v515_v19, 8  ;;  %v485_v23 = vmul.f32 %v1037_v10, %v469_v57 }
 0x25d   :  { %v696_v1 = vpop.eup %695 }
 0x25e   :  { %v402_v25 = vpop.xlane.xlu2 %401  ;;  %v438_v30 = vmul.f32 %v696_v1, %v400_v17  ;;  %v517_v7 = vadd.f32 %v501_v38, %v485_v23 }
 0x25f   :  { %697 = vrcp.f32 %v402_v25 }
 0x260   :  { %v454_v49 = vsub.f32 2.0, %v438_v30 }
 0x262   :  { %v470_v60 = vmul.f32 %v696_v1, %v454_v49 }
 0x264   :  { %532 = vxpose.xlu2.b32.cont [8/16] (narrow) %v516_v32, 8  ;;  %v486_v12 = vmul.f32 %v1041_v14, %v470_v60 }
 0x265   :  { %v698_v36 = vpop.eup %697 }
 0x266   :  { %v404_v4 = vpop.xlane.xlu0 %403  ;;  %v439_v34 = vmul.f32 %v698_v36, %v402_v25  ;;  %v518_v54 = vadd.f32 %v502_v27, %v486_v12 }
 0x267   :  { %699 = vrcp.f32 %v404_v4 }
 0x268   :  { %v455_v52 = vsub.f32 2.0, %v439_v34 }
 0x26a   :  { %v471_v10 = vmul.f32 %v698_v36, %v455_v52 }
 0x26c   :  { %533 = vxpose.xlu2.b32.cont [9/16] (narrow) %v517_v7, 8  ;;  %v487_v47 = vmul.f32 %v1045_v20, %v471_v10 }
 0x26d   :  { %v700_v44 = vpop.eup %699 }
 0x26e   :  { %v406_v42 = vpop.xlane.xlu1 %405  ;;  %v440_v51 = vmul.f32 %v700_v44, %v404_v4  ;;  %v519_v33 = vadd.f32 %v503_v18, %v487_v47 }
 0x26f   :  { %701 = vrcp.f32 %v406_v42 }
 0x270   :  { %v456_v55 = vsub.f32 2.0, %v440_v51 }
 0x272   :  { %v472_v14 = vmul.f32 %v700_v44, %v456_v55 }
 0x274   :  { %534 = vxpose.xlu2.b32.cont [10/16] (narrow) %v518_v54, 8  ;;  %v488_v5 = vmul.f32 %v1049_v24, %v472_v14 }
 0x275   :  { %v702_v50 = vpop.eup %701 }
 0x276   :  { %v408_v37 = vpop.xlane.xlu2 %407  ;;  %v441_v63 = vmul.f32 %v702_v50, %v406_v42  ;;  %v520_v11 = vadd.f32 %v504_v8, %v488_v5 }
 0x277   :  { %703 = vrcp.f32 %v408_v37 }
 0x278   :  { %v457_v58 = vsub.f32 2.0, %v441_v63 }
 0x27a   :  { %v473_v20 = vmul.f32 %v702_v50, %v457_v58 }
 0x27c   :  { %535 = vxpose.xlu2.b32.cont [11/16] (narrow) %v519_v33, 8  ;;  %v489_v39 = vmul.f32 %v1053_v29, %v473_v20 }
 0x27d   :  { %v704_v40 = vpop.eup %703 }
 0x27e   :  { %v410_v2 = vpop.xlane.xlu0 %409  ;;  %v442_v53 = vmul.f32 %v704_v40, %v408_v37  ;;  %v521_v17 = vadd.f32 %v505_v56, %v489_v39 }
 0x27f   :  { %705 = vrcp.f32 %v410_v2 }
 0x280   :  { %v458_v61 = vsub.f32 2.0, %v442_v53 }
 0x282   :  { %v474_v24 = vmul.f32 %v704_v40, %v458_v61 }
 0x284   :  { %536 = vxpose.xlu2.b32.cont [12/16] (narrow) %v520_v11, 8  ;;  %v490_v59 = vmul.f32 %v1057_v35, %v474_v24 }
 0x285   :  { %v706_v16 = vpop.eup %705 }
 0x286   :  { %v412_v13 = vpop.xlane.xlu1 %411  ;;  %v443_v43 = vmul.f32 %v706_v16, %v410_v2  ;;  %v522_v62 = vadd.f32 %v506_v22, %v490_v59 }
 0x287   :  { %707 = vrcp.f32 %v412_v13 }
 0x288   :  { %v459_v0 = vsub.f32 2.0, %v443_v43 }
 0x28a   :  { %v475_v48 = vmul.f32 %v706_v16, %v459_v0 }
 0x28c   :  { %537 = vxpose.xlu2.b32.cont [13/16] (narrow) %v521_v17, 8  ;;  %v491_v19 = vmul.f32 %v1061_v41, %v475_v48 }
 0x28d   :  { %v708_v21 = vpop.eup %707 }
 0x28e   :  { %v444_v29 = vmul.f32 %v708_v21, %v412_v13  ;;  %v523_v26 = vadd.f32 %v507_v46, %v491_v19 }
 0x290   :  { %v460_v3 = vsub.f32 2.0, %v444_v29 }
 0x292   :  { %v476_v25 = vmul.f32 %v708_v21, %v460_v3 }
 0x294   :  { %538 = vxpose.xlu2.b32.cont [14/16] (narrow) %v522_v62, 8  ;;  %v492_v35 = vmul.f32 %v1064_v45, %v476_v25 }
 0x296   :  { %v524_v1 = vadd.f32 %v508_v6, %v492_v35 }
 0x29c   :  { %539 = vxpose.xlu2.b32.cont [15/16] (narrow) %v523_v26, 8 }
 0x2a4   :  { %540 = vxpose.xlu2.b32.end [16/16] (narrow) %v524_v1, 8 }
 0x2c5   :  { %v541_v9 = vpop.trf.xlu2 }
 0x2c6   :  { %557 = vst [vmem:[#allocation2] sm:$0xff] %v541_v9 }
 0x2c7   :  { %568 = dma.vmem_to_hbm [thread:$0]  %s564_s19, 128, %s566_s22, [#allocation3]  }
 0x2c8   :  { %733 = dma.done.wait [#allocation3], 128  }
 0x2c9   :  { %734 = vsyncadd [#allocation3], 4294967168 }
 0x2ca   :  { %573 = vsyncpa [#allocation3], 1 }

</bundles_post_ra>
